<compile_context>
chip_gen: v7x
topology: tpu7x:2x2x1
jax: 0.10.0
libtpu: 0.0.40
codegen_flags: <defaults>
</compile_context>

<pallas_src>
import functools

import jax
import jax.numpy as jnp
from jax import lax
from jax.experimental import pallas as pl
from jax.experimental.pallas import tpu as pltpu


def _ce_kernel(logits_ref, tgt_ref, loss_ref, *, ignore_index):
    # logits_ref: (1, C, TP)   class on sublanes, pixels on lanes
    # tgt_ref:    (1, 1, TP)   int32
    # loss_ref:   (1, 1, TP)   f32
    x = logits_ref[0].astype(jnp.float32)                 # (C, TP) f32 in-register
    t = tgt_ref[0]                                        # (1, TP) int32

    # Numerically stable log-sum-exp over the class (sublane) axis.
    m = jnp.max(x, axis=0, keepdims=True)                 # (1, TP)
    lse = jnp.log(jnp.sum(jnp.exp(x - m), axis=0, keepdims=True)) + m

    # Gather logit at the target class via iota-compare (no dynamic gather).
    # Note: if target == ignore_index (>= C) no class matches -> picked = 0,
    # which is then masked out by `valid` below.
    cls = lax.broadcasted_iota(jnp.int32, x.shape, 0)     # (C, TP)
    picked = jnp.sum(jnp.where(cls == t, x, 0.0), axis=0, keepdims=True)  # (1, TP)

    valid = t != ignore_index                             # (1, TP)
    # Ignored pixels -> 0, matching torch's reduction='none' + ignore_index.
    loss_ref[0] = jnp.where(valid, lse - picked, 0.0)


def per_pixel_cross_entropy(logits_nchw, target_nhw, *, ignore_index=255,
                            tile_p=1024):
    """Per-pixel CE with ignore_index. Returns raw loss flattened to (N*H*W,)."""
    N, C, H, W = logits_nchw.shape
    HW = H * W

    # Free reshapes (contiguous memory): no transpose, no dtype cast in HBM.
    x = logits_nchw.reshape(N, C, HW)
    t = target_nhw.reshape(N, 1, HW).astype(jnp.int32)

    # Tile size: lane-granular (multiple of 128), capped by the image size.
    tile_p = min(tile_p, ((HW + 127) // 128) * 128)
    hw_pad = pl.cdiv(HW, tile_p) * tile_p
    if hw_pad != HW:
        # Only pays an extra copy for resolutions not divisible by the tile.
        x = jnp.pad(x, ((0, 0), (0, 0), (0, hw_pad - HW)))
        t = jnp.pad(t, ((0, 0), (0, 0), (0, hw_pad - HW)),
                    constant_values=ignore_index)

    kernel = functools.partial(_ce_kernel, ignore_index=ignore_index)

    out = pl.pallas_call(
        kernel,
        out_shape=jax.ShapeDtypeStruct((N, 1, hw_pad), jnp.float32),
        grid_spec=pltpu.PrefetchScalarGridSpec(
            num_scalar_prefetch=0,
            grid=(N, hw_pad // tile_p),
            in_specs=[
                pl.BlockSpec((1, C, tile_p), lambda n, j: (n, 0, j)),
                pl.BlockSpec((1, 1, tile_p), lambda n, j: (n, 0, j)),
            ],
            out_specs=pl.BlockSpec((1, 1, tile_p), lambda n, j: (n, 0, j)),
        ),
        compiler_params=pltpu.CompilerParams(
            # No cross-step accumulators -> fully parallel grid (megacore on v7x).
            dimension_semantics=("parallel", "parallel"),
            vmem_limit_bytes=32 * 1024 * 1024,
        ),
    )(x, t)

    # Drop padded pixels (if any) and flatten to (N*H*W,).
    return out[:, 0, :HW].reshape(-1)


def bootstrapped_ce(logits, target, it, *, start_warm, end_warm, top_p=0.15,
                    ignore_index=255):
    """Forward pass of BootstrappedCE. `it`, `start_warm`, `end_warm` are host ints."""
    raw_loss = per_pixel_cross_entropy(logits, target, ignore_index=ignore_index)

    if it < start_warm:
        # F.cross_entropy(..., ignore_index) with default 'mean' reduction:
        # sum(loss) / number of non-ignored pixels.  Ignored pixels contribute 0
        # to raw_loss by construction, so a plain sum + valid count suffices.
        valid_cnt = jnp.sum((target.reshape(-1) != ignore_index).astype(jnp.float32))
        return jnp.sum(raw_loss) / valid_cnt, 1.0

    num_pixels = raw_loss.shape[0]
    if it > end_warm:
        this_p = top_p
    else:
        this_p = top_p + (1.0 - top_p) * ((end_warm - it) / (end_warm - start_warm))

    k = max(1, int(num_pixels * this_p))
    # TPU-optimized approximate top-k (partial reduce); "mean of the hardest
    # pixels" tolerates the approximation and avoids an O(P log P) full sort.
    # TODO(synk): exact torch.topk equivalence would need lax.top_k (full sort).
    topk_vals, _ = lax.approx_max_k(raw_loss, k)
    return jnp.mean(topk_vals), this_p


if __name__ == "__main__":
    key = jax.random.PRNGKey(0)
    k_logits, k_target, k_ignore = jax.random.split(key, 3)

    # Small shapes consistent with a segmentation head: N=2, C=8, H=W=16 -> P=512.
    N, C, H, W = 2, 8, 16, 16
    logits = jax.random.normal(k_logits, (N, C, H, W), dtype=jnp.float32)
    target = jax.random.randint(k_target, (N, H, W), 0, C, dtype=jnp.int32)
    # Sprinkle some ignore_index pixels to exercise masking.
    ignore_mask = jax.random.bernoulli(k_ignore, 0.1, (N, H, W))
    target = jnp.where(ignore_mask, jnp.int32(255), target)

    start_warm, end_warm = 10, 20

    # Warm phase (plain masked-mean CE).
    loss_warm, p_warm = bootstrapped_ce(
        logits, target, it=5, start_warm=start_warm, end_warm=end_warm)
    jax.block_until_ready(loss_warm)

    # Interpolation phase.
    loss_mid, p_mid = bootstrapped_ce(
        logits, target, it=15, start_warm=start_warm, end_warm=end_warm)
    jax.block_until_ready(loss_mid)

    # Fully bootstrapped phase (top_p fraction of hardest pixels).
    loss_boot, p_boot = bootstrapped_ce(
        logits, target, it=25, start_warm=start_warm, end_warm=end_warm)
    jax.block_until_ready(loss_boot)

    assert jnp.isfinite(loss_warm) and jnp.isfinite(loss_mid) and jnp.isfinite(loss_boot)
    print("KERNEL_OK")
</pallas_src>

<mosaic_0001>
module attributes {stable_mosaic.version = 11 : i64} {
  func.func @_ce_kernel(%arg0: i32, %arg1: i32, %arg2: memref<1x8x256xf32, #tpu.memory_space<vmem>>, %arg3: memref<1x1x256xi32, #tpu.memory_space<vmem>>, %arg4: memref<1x1x256xf32, #tpu.memory_space<vmem>>) attributes {dimension_semantics = [#tpu.dimension_semantics<parallel>, #tpu.dimension_semantics<parallel>], iteration_bounds = array<i64: 2, 1>, scalar_prefetch = 0 : i64, scratch_operands = 0 : i64, tpu.core_type = #tpu.core_type<tc>, window_params = [{transform_indices = @transform_0, window_bounds = array<i64: 1, 8, 256>}, {transform_indices = @transform_1, window_bounds = array<i64: 1, 1, 256>}, {transform_indices = @transform_2, window_bounds = array<i64: 1, 1, 256>}]} {
    %c0 = arith.constant 0 : index
    %c0_0 = arith.constant 0 : index
    %c0_1 = arith.constant 0 : index
    %0 = vector.load %arg2[%c0, %c0_0, %c0_1] : memref<1x8x256xf32, #tpu.memory_space<vmem>>, vector<1x8x256xf32>
    %1 = vector.shape_cast %0 : vector<1x8x256xf32> to vector<8x256xf32>
    %c0_2 = arith.constant 0 : index
    %c0_3 = arith.constant 0 : index
    %c0_4 = arith.constant 0 : index
    %2 = vector.load %arg3[%c0_2, %c0_3, %c0_4] : memref<1x1x256xi32, #tpu.memory_space<vmem>>, vector<1x1x256xi32>
    %3 = vector.shape_cast %2 : vector<1x1x256xi32> to vector<1x256xi32>
    %cst = arith.constant dense<0xFF800000> : vector<256xf32>
    %4 = vector.multi_reduction <maximumf>, %1, %cst [0] : vector<8x256xf32> to vector<256xf32>
    %5 = vector.shape_cast %4 : vector<256xf32> to vector<1x256xf32>
    %6 = vector.broadcast %5 : vector<1x256xf32> to vector<8x256xf32>
    %7 = arith.subf %1, %6 : vector<8x256xf32>
    %8 = math.exp %7 : vector<8x256xf32>
    %cst_5 = arith.constant dense<0.000000e+00> : vector<256xf32>
    %9 = vector.multi_reduction <add>, %8, %cst_5 [0] : vector<8x256xf32> to vector<256xf32>
    %10 = vector.shape_cast %9 : vector<256xf32> to vector<1x256xf32>
    %11 = math.log %10 : vector<1x256xf32>
    %12 = arith.addf %11, %5 : vector<1x256xf32>
    %13 = tpu.iota {dimensions = array<i32: 0>} : vector<8x256xi32>
    %14 = vector.broadcast %3 : vector<1x256xi32> to vector<8x256xi32>
    %15 = arith.cmpi eq, %13, %14 : vector<8x256xi32>
    %cst_6 = arith.constant 0.000000e+00 : f32
    %16 = vector.broadcast %cst_6 : f32 to vector<8x256xf32>
    %17 = arith.select %15, %1, %16 : vector<8x256xi1>, vector<8x256xf32>
    %cst_7 = arith.constant dense<0.000000e+00> : vector<256xf32>
    %18 = vector.multi_reduction <add>, %17, %cst_7 [0] : vector<8x256xf32> to vector<256xf32>
    %19 = vector.shape_cast %18 : vector<256xf32> to vector<1x256xf32>
    %c255_i32 = arith.constant 255 : i32
    %20 = vector.broadcast %c255_i32 : i32 to vector<1x256xi32>
    %21 = arith.cmpi ne, %3, %20 : vector<1x256xi32>
    %22 = arith.subf %12, %19 : vector<1x256xf32>
    %cst_8 = arith.constant 0.000000e+00 : f32
    %23 = vector.broadcast %cst_8 : f32 to vector<1x256xf32>
    %24 = arith.select %21, %22, %23 : vector<1x256xi1>, vector<1x256xf32>
    %c0_9 = arith.constant 0 : index
    %c0_10 = arith.constant 0 : index
    %c0_11 = arith.constant 0 : index
    %25 = vector.load %arg4[%c0_9, %c0_10, %c0_11] : memref<1x1x256xf32, #tpu.memory_space<vmem>>, vector<1x1x256xf32>
    %26 = vector.shape_cast %25 : vector<1x1x256xf32> to vector<1x256xf32>
    %27 = vector.shape_cast %24 : vector<1x256xf32> to vector<1x1x256xf32>
    tpu.vector_store %arg4[%c0_9, %c0_10, %c0_11], %27 {strides = array<i32>} : memref<1x1x256xf32, #tpu.memory_space<vmem>>, vector<1x1x256xf32>,
    return
  }
  func.func @transform_0(%arg0: i32, %arg1: i32) -> (i32, i32, i32) {
    %c0_i32 = arith.constant 0 : i32
    %c0_i32_0 = arith.constant 0 : i32
    return %arg0, %c0_i32, %arg1 : i32, i32, i32
  }
  func.func @transform_1(%arg0: i32, %arg1: i32) -> (i32, i32, i32) {
    %c0_i32 = arith.constant 0 : i32
    %c0_i32_0 = arith.constant 0 : i32
    return %arg0, %c0_i32, %arg1 : i32, i32, i32
  }
  func.func @transform_2(%arg0: i32, %arg1: i32) -> (i32, i32, i32) {
    %c0_i32 = arith.constant 0 : i32
    %c0_i32_0 = arith.constant 0 : i32
    return %arg0, %c0_i32, %arg1 : i32, i32, i32
  }
}

</mosaic_0001>

<bundles_post_ra>
// kernel: tpu_custom_call.1
= control target key start
LH: loop header
LB: loop body
LE: loop exit
PB: predicated region body
PF: predicated region fallthrough
CT: control target
= control target key end

     0   :  { %7 = vsyncpa [#allocation3], 0  ;;  %s928_s0 = inlined_call_operand.hbm [shape: f32[2,8,256], index: 0, kind: input, shape index: {}]   ;;  %s929_s1 = inlined_call_operand.hbm [shape: s32[2,1,256], index: 1, kind: input, shape index: {}]   ;;  %s930_s2 = inlined_call_operand.hbm [shape: f32[2,1,256], index: 2, kind: output, shape index: {}]  }
   0x1   :  { %9 = vsyncpa [#allocation3 + $0x1], 0 }
   0x2   :  { %10 = vsyncpa [#allocation6], 0 }
   0x3   :  { %12 = vsyncpa [#allocation6 + $0x1], 0 }
   0x4   :  { %13 = vsyncpa [#allocation4], 0 }
   0x5   :  { %15 = vsyncpa [#allocation4 + $0x1], 0  ;;  %s707_s9 = smov 0   ;;  %s709_s10 = smov 0  }
   0x6   :  { %s711_s11 = smov 0   ;;  %s713_s12 = smov 0  }
   0x7   :  { %s715_s13 = smov 0   ;;  %s717_s14 = smov 0  }
   0x8 LB: > { %s442_s15 = sadd.s32 4294967295, %s686_s14   ;;  %s443_s16 = sadd.s32 4294967294, %s686_s14   ;;  %s686_s14 = sphi %s717_s14, %s21_s14   ;;  %s682_s13 = sphi %s715_s13, %s950_s13   ;;  %s678_s12 = sphi %s713_s12, %s949_s12   ;;  %s674_s11 = sphi %s711_s11, %s948_s11   ;;  %s670_s10 = sphi %s709_s10, %s947_s10   ;;  %s666_s9 = sphi %s707_s9, %s946_s9  }
   0x9   : > { %s33_s17 = sadd.s32 1, %s682_s13  ;;  %s42_s18 = sadd.s32 1, %s674_s11 }
   0xa   : > { %p35_p0 = scmp.ge.s32.totalorder %s33_s17, 2  ;;  %p49_p1 = scmp.ne.s32.totalorder %s674_s11, %s670_s10 }
   0xb   : > { %p50_p2 = scmp.eq.s32.totalorder %s686_s14, 0  ;;  %p55_p3 = scmp.ne.s32.totalorder %s670_s10, %s666_s9 }
   0xc   : > { %s952_s17 = smov (%p35_p0, %s33_s17), 0  ;;  %p56_p5 = scmp.eq.s32.totalorder %s442_s15, 0 }
   0xd   : > { %p748_p4 = por %p50_p2, %p49_p1  ;;  %s37_s20 = ssub.s32 %s682_s13, %s952_s17 }
   0xe   : > { %p109_p6 = scmp.eq.s32.totalorder %s442_s15, 1  ;;  %p40_p7 = scmp.eq.s32.totalorder %s37_s20, 0 }
   0xf   : > { %p754_p8 = por %p56_p5, %p55_p3  ;;  %p115_p10 = scmp.eq.s32.totalorder %s443_s16, 1 }
  0x10   : > { %p758_p9 = por %p109_p6, %p49_p1  ;;  %p481_p13 = scmp.lt.s32.totalorder %s686_s14, 2 }
  0x11   : > { %s934_s21 = scalar_select %p754_p8, 1, 0 }
  0x12   : > { %s935_s22 = scalar_select %p758_p9, 1, 0 }
  0x13   : > { %s763_s23 = scalar_select %p40_p7, %s674_s11, %s42_s18  }
  0x14   : > { %p765_p11 = por %p115_p10, %p55_p3  ;;  %s772_s25 = sand.u32 1, %s674_s11  }
  0x15   : > { %s446_s26 = sshll.u32 %s772_s25, 4  ;;  %s461_s27 = sshll.u32 %s682_s13, 8 }
  0x16   : > { %s936_s24 = scalar_select %p765_p11, 1, 0 }
  0x17   : > { %s779_s30 = scalar_lea.hbm %s928_s0, %s461_s27  ;;  %s139_s3 = scalar_lea.vmem [#allocation2], %s446_s26 }
  0x18   : > { %s149_s4 = sshll.u32 %s139_s3, 4  ;;  %p785_p0 = pnand %p481_p13, %p748_p4  ;;  %s781_s4 = int_to_ptr.vmem [resolvable:$true] %s149_s4 }
  0x19   : > { %s136_s6 = scalar_lea.sflag [#allocation3], %s772_s25  ;;  %s540_s7 = scalar_lea.hbm %s779_s30, 256 }
  0x1a   : > { %p541_p3 = scmp.ne.s32.totalorder %s779_s30, %s540_s7  ;;  %p542_p5 = pneg %p785_p0 }
  0x1b   : > { %s545_s16 = scalar_lea.hbm %s928_s0, 512  ;;  %p546_p4 = scmp.lt.u32.totalorder %s779_s30, %s928_s0 }
  0x1c   : > { %p543_p6 = pnand %p542_p5, %p541_p3  ;;  %p547_p10 = scmp.lt.u32.totalorder %s545_s16, %s540_s7 }
  0x1d   : > { %p549_p12 = scmp.lt.u32.totalorder %s540_s7, %s779_s30 }
  0x1e   : > { %p544_p7 = pneg %p543_p6  ;;  %p548_p13 = por %p547_p10, %p546_p4 }
  0x20   : > { %p550_p1 = por %p549_p12, %p548_p13 }
  0x22   : > { %p551_p2 = pnand %p550_p1, %p544_p7 }
  0x24   : > { %554 = shalt.err (!%p551_p2)
}
  0x25   : > { %s555_s20 = scalar_lea.vmem %s781_s4, 256  ;;  %s688_s26 = smov [#allocation2]  }
  0x26   : > { %p556_p3 = scmp.ne.s32.totalorder %s781_s4, %s555_s20  ;;  %s560_s27 = sshll.u32 %s688_s26, 4  ;;  %s561_s27 = int_to_ptr.vmem [resolvable:$false] %s560_s27 }
  0x27   : > { %s562_s28 = scalar_lea.vmem %s561_s27, 512  ;;  %p563_p9 = scmp.lt.s32.totalorder %s781_s4, %s561_s27 }
  0x28   : > { %p558_p6 = pnand %p556_p3, %p542_p5  ;;  %p564_p4 = scmp.lt.s32.totalorder %s562_s28, %s555_s20 }
  0x2a   : > { %p559_p11 = pneg %p558_p6  ;;  %p565_p10 = por %p564_p4, %p563_p9 }
  0x2c   : > { %p566_p12 = pnand %p565_p10, %p559_p11 }
  0x2e   : > { %569 = shalt.err (!%p566_p12)
}
  0x2f   : > { %473 = dma.hbm_to_vmem [thread:$0]  (!%p785_p0), %s779_s30, 256, %s781_s4, %s136_s6  }
  0x30   : > { %p938_p1 = scmp.lt.s32.totalorder %s686_s14, 3  ;;  %p939_p2 = scmp.ge.s32.totalorder %s686_s14, 1 }
  0x31   : > { %s449_s3 = sshll.u32 %s772_s25, 1  ;;  %s462_s7 = sshll.u32 %s682_s13, 5 }
  0x32   : > { %p821_p7 = pnand %p939_p2, %p938_p1  ;;  %s830_s16 = scalar_lea.hbm %s929_s1, %s462_s7 }
  0x33   : > { %s160_s18 = scalar_lea.vmem [#allocation5], %s449_s3  ;;  %s157_s30 = scalar_lea.sflag [#allocation6], %s772_s25 }
  0x34   : > { %s940_s29 = scalar_select %p821_p7, 1, 0 }
  0x35   : > { %s170_s19 = sshll.u32 %s160_s18, 4  ;;  %s570_s4 = scalar_lea.hbm %s830_s16, 32  ;;  %s171_s19 = int_to_ptr.vmem [resolvable:$true] %s170_s19 }
  0x36   : > { %p571_p9 = scmp.ne.s32.totalorder %s830_s16, %s570_s4  ;;  %s575_s26 = scalar_lea.hbm %s929_s1, 64 }
  0x37   : > { %p576_p3 = scmp.lt.u32.totalorder %s830_s16, %s929_s1  ;;  %p577_p6 = scmp.lt.u32.totalorder %s575_s26, %s570_s4 }
  0x38   : > { %p573_p11 = pnand %p571_p9, %p542_p5  ;;  %p579_p10 = scmp.lt.u32.totalorder %s570_s4, %s830_s16 }
  0x39   : > { %p578_p4 = por %p577_p6, %p576_p3 }
  0x3a   : > { %p574_p13 = pneg %p573_p11 }
  0x3b   : > { %p580_p12 = por %p579_p10, %p578_p4 }
  0x3d   : > { %p581_p1 = pnand %p580_p12, %p574_p13 }
  0x3f   : > { %584 = shalt.err (!%p581_p1)
}
  0x40   : > { %s585_s25 = scalar_lea.vmem %s171_s19, 32  ;;  %s689_s3 = smov [#allocation5]  }
  0x41   : > { %p586_p2 = scmp.ne.s32.totalorder %s171_s19, %s585_s25  ;;  %s590_s7 = sshll.u32 %s689_s3, 4  ;;  %s591_s7 = int_to_ptr.vmem [resolvable:$false] %s590_s7 }
  0x42   : > { %s592_s8 = scalar_lea.vmem %s591_s7, 64  ;;  %p593_p8 = scmp.lt.s32.totalorder %s171_s19, %s591_s7 }
  0x43   : > { %p588_p9 = pnand %p586_p2, %p542_p5  ;;  %p594_p7 = scmp.lt.s32.totalorder %s592_s8, %s585_s25 }
  0x45   : > { %p589_p11 = pneg %p588_p9  ;;  %p595_p3 = por %p594_p7, %p593_p8 }
  0x47   : > { %p596_p6 = pnand %p595_p3, %p589_p11 }
  0x49   : > { %599 = shalt.err (!%p596_p6)
}
  0x4a   : > { %476 = dma.hbm_to_vmem [thread:$0]  (!%p785_p0), %s830_s16, 32, %s171_s19, %s157_s30  }
  0x4b   : > { %p941_p13 = scmp.ne.s32.totalorder %s940_s29, 0 }
  0x4c   : > { %s855_s15 = sand.u32 (!%p941_p13), 1, %s670_s10   ;;  %p942_p5 = scmp.ne.s32.totalorder (!%p941_p13), %s934_s21, 0 }
  0x4d   : > { %179 = sbr.rel (%p941_p13) target bundleno = 167 (0xa7), region = 28  ;;  %s453_s18 = sshll.u32 (!%p941_p13), %s855_s15, 4 }
  0x4e   : > { %s182_s4 = scalar_lea.sflag (!%p941_p13), [#allocation3], %s855_s15  ;;  %s185_s6 = scalar_lea.vmem (!%p941_p13), [#allocation2], %s453_s18 }
  0x54   : > { %653 = dma.done.wait (%p942_p5), %s182_s4, 256  }
  0x55   : > { %655 = vsyncadd (%p942_p5), %s182_s4, 4294967040  ;;  %s454_s5 = sshll.u32 %s855_s15, 1  ;;  %s191_s29 = scalar_lea.sflag [#allocation6], %s855_s15 }
  0x56   : > { %s194_s16 = scalar_lea.vmem [#allocation5], %s454_s5 }
  0x57   : > { %657 = dma.done.wait (%p942_p5), %s191_s29, 32  }
  0x58   : > { %659 = vsyncadd (%p942_p5), %s191_s29, 4294967264  ;;  %v223_v0 = vld [vmem:[%s185_s6] sm:$0xff]  ;;  %v224_v1 = vld [vmem:[%s185_s6 + $0x8] sm:$0xff]  ;;  %v262_v12 = vlaneseq  ;;  %v690_v51 = vmov 1966171168   ;;  %s219_s21 = scalar_lea.vmem [#allocation7], %s454_s5 }
  0x59   : > { %v226_v2 = vrot.slane %v223_v0, 4  ;;  %v232_v3 = vrot.slane %v224_v1, 4  ;;  %v225_v21 = vld [vmem:[%s194_s16] sm:$0x3]  ;;  %v295_v52 = vunpack.c.l.s4 %v690_v51  ;;  %s332_s19 = sshll.u32 %s219_s21, 4  ;;  %s463_s30 = sshll.u32 %s678_s12, 5  ;;  %s876_s19 = int_to_ptr.vmem [resolvable:$true] %s332_s19 }
  0x5a   : > { %v263_v17 = vshrl.u32 %v262_v12, 7  ;;  %vm288_vm2 = vcmp.ne.s32.totalorder %v225_v21, 255  ;;  %vm312_vm3 = vcmp.lt.s32.totalorder %v262_v12, 256  ;;  %s881_s27 = scalar_lea.hbm %s930_s2, %s463_s30  ;;  %s316_s28 = scalar_lea.sflag [#allocation4], %s855_s15 }
  0x5b   : > { %v227_v4 = vmax.f32 %v223_v0, %v226_v2  ;;  %v233_v5 = vmax.f32 %v224_v1, %v232_v3  ;;  %v296_v59 = vunpack.c.0.s8 %v295_v52  ;;  %s600_s25 = scalar_lea.vmem %s876_s19, 32  ;;  %p943_p0 = scmp.ne.s32.totalorder %s935_s22, 0 }
  0x5c   : > { %v266_v20 = vsub.s32 0, %v263_v17  ;;  %v270_v22 = vsub.s32 1, %v263_v17  ;;  %p601_p8 = scmp.ne.s32.totalorder %s876_s19, %s600_s25  ;;  %s691_s12 = smov [#allocation7]  }
  0x5d   : > { %v228_v6 = vrot.slane %v227_v4, 2  ;;  %v234_v7 = vrot.slane %v233_v5, 2  ;;  %s604_s3 = sshll.u32 %s691_s12, 4  ;;  %s605_s3 = int_to_ptr.vmem [resolvable:$false] %s604_s3 }
  0x5e   : > { %v267_v23 = vrot.slane %v225_v21, %v266_v20  ;;  %v271_v24 = vrot.slane %v225_v21, %v270_v22  ;;  %p602_p7 = pnand %p601_p8, %p943_p0  ;;  %s606_s7 = scalar_lea.vmem %s605_s3, 64 }
  0x5f   : > { %v229_v8 = vmax.f32 %v227_v4, %v228_v6  ;;  %v235_v9 = vmax.f32 %v233_v5, %v234_v7  ;;  %p607_p10 = scmp.lt.s32.totalorder %s876_s19, %s605_s3  ;;  %p608_p12 = scmp.lt.s32.totalorder %s606_s7, %s600_s25 }
  0x60   : > { %vm272_vm0 = vcmp.eq.s32.totalorder %v263_v17, %v267_v23  ;;  %vm273_vm1 = vcmp.eq.s32.totalorder %v263_v17, %v271_v24  ;;  %p603_p4 = pneg %p602_p7 }
  0x61   : > { %v230_v10 = vrot.slane %v229_v8, 1  ;;  %v236_v11 = vrot.slane %v235_v9, 1  ;;  %v274_v28 = vsel %vm272_vm0, %v223_v0, 0.0  ;;  %v275_v30 = vsel %vm273_vm1, %v224_v1, 0.0  ;;  %p609_p1 = por %p608_p12, %p607_p10 }
  0x62   : > { %v276_v33 = vrot.slane %v274_v28, 4  ;;  %v282_v35 = vrot.slane %v275_v30, 4 }
  0x63   : > { %v231_v13 = vmax.f32 %v229_v8, %v230_v10  ;;  %v237_v14 = vmax.f32 %v235_v9, %v236_v11  ;;  %p610_p2 = pnand %p609_p1, %p603_p4 }
  0x64   : > { %v277_v39 = vadd.f32 %v276_v33, %v274_v28  ;;  %v283_v41 = vadd.f32 %v282_v35, %v275_v30 }
  0x65   : > { %v238_v15 = vsub.f32 %v223_v0, %v231_v13  ;;  %v239_v16 = vsub.f32 %v224_v1, %v237_v14  ;;  %v299_v0 = vsub.s32 %v296_v59, %v263_v17 }
  0x66   : > { %v278_v45 = vrot.slane %v277_v39, 2  ;;  %v284_v46 = vrot.slane %v283_v41, 2 }
  0x67   : > { %v240_v18 = vmul.f32 1.442695, %v238_v15  ;;  %v242_v19 = vmul.f32 1.442695, %v239_v16 }
  0x68   : > { %v279_v47 = vadd.f32 %v278_v45, %v277_v39  ;;  %v285_v48 = vadd.f32 %v284_v46, %v283_v41 }
  0x69   : > { %532 = vpow2.f32 %v240_v18 }
  0x6a   : > { %534 = vpow2.f32 %v242_v19  ;;  %v280_v49 = vrot.slane %v279_v47, 1  ;;  %v286_v50 = vrot.slane %v285_v48, 1 }
  0x6c   : > { %v281_v56 = vadd.f32 %v280_v49, %v279_v47  ;;  %v287_v58 = vadd.f32 %v286_v50, %v285_v48 }
  0x73   : > { %v533_v25 = vpop.eup %532 }
  0x74   : > { %v535_v26 = vpop.eup %534  ;;  %v244_v27 = vrot.slane %v533_v25, 4 }
  0x75   : > { %v250_v29 = vrot.slane %v535_v26, 4 }
  0x76   : > { %v245_v31 = vadd.f32 %v533_v25, %v244_v27 }
  0x77   : > { %v251_v32 = vadd.f32 %v535_v26, %v250_v29 }
  0x78   : > { %v246_v34 = vrot.slane %v245_v31, 2 }
  0x79   : > { %v252_v36 = vrot.slane %v251_v32, 2 }
  0x7a   : > { %v247_v37 = vadd.f32 %v246_v34, %v245_v31 }
  0x7b   : > { %v253_v38 = vadd.f32 %v252_v36, %v251_v32 }
  0x7c   : > { %v248_v40 = vrot.slane %v247_v37, 1 }
  0x7d   : > { %v254_v42 = vrot.slane %v253_v38, 1 }
  0x7e   : > { %v249_v43 = vadd.f32 %v248_v40, %v247_v37 }
  0x7f   : > { %v255_v44 = vadd.f32 %v254_v42, %v253_v38 }
  0x80   : > { %536 = vlog2.f32 %v249_v43 }
  0x81   : > { %538 = vlog2.f32 %v255_v44 }
  0x8a   : > { %v537_v53 = vpop.eup %536 }
  0x8b   : > { %v539_v54 = vpop.eup %538  ;;  %v257_v55 = vmul.f32 0.6931472, %v537_v53 }
  0x8c   : > { %v259_v57 = vmul.f32 0.6931472, %v539_v54 }
  0x8d   : > { %v260_v60 = vadd.f32 %v257_v55, %v231_v13 }
  0x8e   : > { %v261_v61 = vadd.f32 %v259_v57, %v237_v14 }
  0x8f   : > { %v289_v62 = vsub.f32 %v260_v60, %v281_v56 }
  0x90   : > { %v290_v63 = vsub.f32 %v261_v61, %v287_v58 }
  0x92   : > { %v293_v1 = vcombine.low %v289_v62, %v290_v63 }
  0x94   : > { %v300_v2 = vrot.slane %v293_v1, %v299_v0 }
  0x96   : > { %v307_v3 = vrot.slane %v300_v2, %v299_v0 }
  0x98   : > { %v309_v4 = vsel %vm288_vm2, %v307_v3, 0.0 }
  0x99   : > { %314 = vst.msk [vmem:[%s219_s21] sm:$0x3] %vm312_vm3, %v309_v4 }
  0x9a   : > { %613 = shalt.err (!%p610_p2)
}
  0x9b   : > { %s614_s8 = scalar_lea.hbm %s881_s27, 32  ;;  %s618_s4 = scalar_lea.hbm %s930_s2, 64 }
  0x9c   : > { %p615_p9 = scmp.ne.s32.totalorder %s881_s27, %s614_s8  ;;  %p619_p6 = scmp.lt.u32.totalorder %s881_s27, %s930_s2 }
  0x9d   : > { %p620_p13 = scmp.lt.u32.totalorder %s618_s4, %s614_s8  ;;  %p622_p8 = scmp.lt.u32.totalorder %s614_s8, %s881_s27 }
  0x9e   : > { %p616_p11 = pnand %p615_p9, %p943_p0 }
  0x9f   : > { %p621_p5 = por %p620_p13, %p619_p6 }
  0xa0   : > { %p617_p3 = pneg %p616_p11 }
  0xa1   : > { %p623_p7 = por %p622_p8, %p621_p5 }
  0xa3   : > { %p624_p4 = pnand %p623_p7, %p617_p3 }
  0xa5   : > { %627 = shalt.err (!%p624_p4)
}
  0xa6   : > { %468 = dma.vmem_to_hbm [thread:$0]  (%p943_p0), %s876_s19, 32, %s881_s27, %s316_s28  }
  0xa7 PF: > { %s344_s29 = sand.u32 1, %s666_s9   ;;  %p944_p10 = scmp.ne.s32.totalorder %s936_s24, 0 }
  0xa8   : > { %p945_p12 = scmp.ge.s32.totalorder %s686_s14, 2  ;;  %s345_s16 = scalar_lea.sflag [#allocation4], %s344_s29 }
  0xaa   : > { %p478_p1 = pnand %p945_p12, %p944_p10 }
  0xac   : > { %661 = dma.done.wait (!%p478_p1), %s345_s16, 32  }
  0xad   : > { %663 = vsyncadd (!%p478_p1), %s345_s16, 4294967264  ;;  %s21_s14 = sadd.s32 1, %s686_s14   ;;  %s946_s9 = smov %s670_s10 }
  0xae   : > { %p18_p2 = scmp.ge.s32.totalorder %s21_s14, 4   ;;  %s947_s10 = smov %s674_s11 }
  0xaf   : > { %s948_s11 = smov %s763_s23  ;;  %s949_s12 = smov %s682_s13 }
  0xb0   : > { %s950_s13 = smov %s952_s17  ;;  %20 = sbr.rel (!%p18_p2) target bundleno = 8 (0x8), region = 86 }
  0xb7   :  { %350 = vsyncpa [#allocation3], 1 }
  0xb8   :  { %352 = vsyncpa [#allocation3 + $0x1], 1 }
  0xb9   :  { %353 = vsyncpa [#allocation6], 1 }
  0xba   :  { %355 = vsyncpa [#allocation6 + $0x1], 1 }
  0xbb   :  { %356 = vsyncpa [#allocation4], 1 }
  0xbc   :  { %358 = vsyncpa [#allocation4 + $0x1], 1 }

</bundles_post_ra>
